<compile_context>
chip_gen: v7x
topology: tpu7x:2x2x1
jax: 0.10.0
libtpu: 0.0.40
codegen_flags: <defaults>
</compile_context>

<pallas_src>
import jax
import jax.numpy as jnp
from jax.experimental import pallas as pl
from jax.experimental.pallas import tpu as pltpu


def _round_up(x: int, m: int) -> int:
    return (x + m - 1) // m * m


def _ape_matmul_kernel(q_ref, e_ref, o_ref):
    # q_ref: (TM, D)   e_ref: (D, J)   o_ref: (TM, J)
    # embT already has the logits scale folded in; D is the contracting leading
    # dim of the RHS so the MXU consumes it directly (no transpose/relayout).
    o_ref[...] = jnp.dot(
        q_ref[...], e_ref[...], preferred_element_type=jnp.float32
    ).astype(o_ref.dtype)


def _pick_row_tile(M: int, J: int, itemsize: int, row_tile: int) -> int:
    """Pick the row-tile size (multiple of 8; preferably multiple of 256)."""
    tm = max(8, min(row_tile, _round_up(M, 8)))
    # Keep the double-buffered (q tile + out tile) footprint under ~24 MiB so
    # it fits comfortably in every generation's scoped VMEM (v5e/v6e/v7x);
    # VMEM rounds the last dim up to 128 lanes.
    j_lanes = _round_up(max(J, 1), 128)
    while tm > 256 and 2 * tm * (j_lanes + 128) * itemsize > 24 * 1024 * 1024:
        tm //= 2
    # Keep >= 2 row tiles when there is enough work so that
    # dimension_semantics=("parallel",) can shard across v7x's two TensorCores
    # (a single giant tile would idle one TC). Costs ~0.35us extra on 1-TC gens.
    if pl.cdiv(M, tm) < 2 and M >= 512:
        tm = _round_up(pl.cdiv(M, 2), 256)
    return tm


def absolute_position_embedding(q, height, width, dim_head, *, row_tile=1024):
    """q: (B, H, I, D); height/width: (fmap, D). Returns (B, H, I, fmap*fmap)."""
    B, H, I, D = q.shape
    F, Dh = height.shape
    assert D == Dh == dim_head
    J = F * F
    scale = float(dim_head) ** (-0.5)

    # Hoist constant work out of the kernel (same for every (b, h) / row tile):
    # scale-folded, transposed embedding, in q.dtype for a native MXU matmul.
    emb_t = (
        ((height[:, None, :] + width[None, :, :]).reshape(J, D) * scale).T
    ).astype(q.dtype)  # (D, J)

    # Collapse (B, H, I) into the matmul M dimension. No row padding: Pallas
    # masks the ragged last block's writes, so no jnp.pad / output slice copies.
    M = B * H * I
    q2 = q.reshape(M, D)

    itemsize = jnp.dtype(q.dtype).itemsize
    tm = _pick_row_tile(M, J, itemsize, row_tile)
    grid = (pl.cdiv(M, tm),)

    # VMEM budget (lane-rounded): 2 x (q tile + out tile) + resident embT.
    d_lanes = _round_up(D, 128)
    j_lanes = _round_up(J, 128)
    need = 2 * (tm * d_lanes + tm * j_lanes + _round_up(D, 8) * j_lanes) * itemsize
    vmem_limit = int(min(64 * 1024 * 1024, max(32 * 1024 * 1024, 1.5 * need)))

    out = pl.pallas_call(
        _ape_matmul_kernel,
        out_shape=jax.ShapeDtypeStruct((M, J), q.dtype),
        grid=grid,
        in_specs=[
            pl.BlockSpec((tm, D), lambda i: (i, 0)),
            pl.BlockSpec((D, J), lambda i: (0, 0)),  # resident across all steps
        ],
        out_specs=pl.BlockSpec((tm, J), lambda i: (i, 0)),
        compiler_params=pltpu.CompilerParams(
            dimension_semantics=("parallel",),
            vmem_limit_bytes=vmem_limit,
        ),
        cost_estimate=pl.CostEstimate(
            flops=2 * M * D * J,
            transcendentals=0,
            bytes_accessed=itemsize * (M * D + D * J + M * J),
        ),
    )(q2, emb_t)

    # No trailing slice: output shape is exactly (M, J); reshape is metadata-only.
    return out.reshape(B, H, I, J)


if __name__ == "__main__":
    # Small shapes consistent with the module: seq_i == fmap_size ** 2
    B, HEADS = 2, 4
    FMAP = 8
    DIM_HEAD = 32
    I = FMAP * FMAP

    key = jax.random.PRNGKey(0)
    kq, kh, kw = jax.random.split(key, 3)

    scale = float(DIM_HEAD) ** (-0.5)
    # Deterministic parameter init mirroring torch.randn(fmap, dim_head) * scale
    height = jax.random.normal(kh, (FMAP, DIM_HEAD), dtype=jnp.float32) * scale
    width = jax.random.normal(kw, (FMAP, DIM_HEAD), dtype=jnp.float32) * scale

    q = jax.random.normal(kq, (B, HEADS, I, DIM_HEAD), dtype=jnp.float32)

    out = absolute_position_embedding(q, height, width, DIM_HEAD)
    out = jax.block_until_ready(out)

    # Pure-JAX reference check
    emb = (height[:, None, :] + width[None, :, :]).reshape(FMAP * FMAP, DIM_HEAD)
    ref = jnp.einsum("bhid,jd->bhij", q, emb) * scale
    assert out.shape == (B, HEADS, I, FMAP * FMAP)
    assert out.dtype == q.dtype
    assert jnp.allclose(out, ref, atol=1e-5, rtol=1e-5)

    print("KERNEL_OK")
</pallas_src>

<mosaic_0001>
module attributes {stable_mosaic.version = 11 : i64} {
  func.func @_ape_matmul_kernel(%arg0: i32, %arg1: memref<256x32xf32, #tpu.memory_space<vmem>>, %arg2: memref<32x64xf32, #tpu.memory_space<vmem>>, %arg3: memref<256x64xf32, #tpu.memory_space<vmem>>) attributes {dimension_semantics = [#tpu.dimension_semantics<parallel>], iteration_bounds = array<i64: 2>, scalar_prefetch = 0 : i64, scratch_operands = 0 : i64, tpu.core_type = #tpu.core_type<tc>, window_params = [{transform_indices = @transform_0, window_bounds = array<i64: 256, 32>}, {pipeline_mode = #tpu.pipeline_mode<synchronous>, transform_indices = @transform_1, window_bounds = array<i64: 32, 64>}, {transform_indices = @transform_2, window_bounds = array<i64: 256, 64>}]} {
    %c0 = arith.constant 0 : index
    %c0_0 = arith.constant 0 : index
    %0 = vector.load %arg1[%c0, %c0_0] : memref<256x32xf32, #tpu.memory_space<vmem>>, vector<256x32xf32>
    %c0_1 = arith.constant 0 : index
    %c0_2 = arith.constant 0 : index
    %1 = vector.load %arg2[%c0_1, %c0_2] : memref<32x64xf32, #tpu.memory_space<vmem>>, vector<32x64xf32>
    %cst = arith.constant dense<0.000000e+00> : vector<256x64xf32>
    %2 = tpu.matmul %0, %1, %cst {dimension_numbers = #tpu.dot_dimension_numbers<[1], [0], [0], [1], [0, 0, 1, 1], [], []>} : vector<256x32xf32>, vector<32x64xf32>, vector<256x64xf32> -> vector<256x64xf32>
    %c0_3 = arith.constant 0 : index
    %c0_4 = arith.constant 0 : index
    %3 = vector.load %arg3[%c0_3, %c0_4] : memref<256x64xf32, #tpu.memory_space<vmem>>, vector<256x64xf32>
    tpu.vector_store %arg3[%c0_3, %c0_4], %2 {strides = array<i32>} : memref<256x64xf32, #tpu.memory_space<vmem>>, vector<256x64xf32>,
    return
  }
  func.func @transform_0(%arg0: i32) -> (i32, i32) {
    %c0_i32 = arith.constant 0 : i32
    %c0_i32_0 = arith.constant 0 : i32
    return %arg0, %c0_i32 : i32, i32
  }
  func.func @transform_1(%arg0: i32) -> (i32, i32) {
    %c0_i32 = arith.constant 0 : i32
    %c0_i32_0 = arith.constant 0 : i32
    %c0_i32_1 = arith.constant 0 : i32
    return %c0_i32, %c0_i32_0 : i32, i32
  }
  func.func @transform_2(%arg0: i32) -> (i32, i32) {
    %c0_i32 = arith.constant 0 : i32
    %c0_i32_0 = arith.constant 0 : i32
    return %arg0, %c0_i32 : i32, i32
  }
}

</mosaic_0001>

<bundles_post_ra>
// kernel: tpu_custom_call.1
= control target key start
LH: loop header
LB: loop body
LE: loop exit
PB: predicated region body
PF: predicated region fallthrough
CT: control target
= control target key end

     0   :  { %s772_s9 = smov 0   ;;  %s940_s0 = inlined_call_operand.vmem [shape: f32[512,32], index: 0, kind: input, shape index: {}]   ;;  %s941_s1 = inlined_call_operand.vmem [shape: f32[32,64], index: 1, kind: input, shape index: {}]   ;;  %s942_s2 = inlined_call_operand.vmem [shape: f32[512,64], index: 2, kind: output, shape index: {}]  }
   0x1 LB: > { %s594_s10 = sadd.s32 4294967295, %s755_s9   ;;  %p598_p0 = scmp.ge.s32.totalorder %s755_s9, 1  ;;  %s755_s9 = sphi %s772_s9, %s12_s9  }
   0x2   : > { %p113_p1 = scmp.lt.s32.totalorder %s755_s9, 3 }
   0x4   : > { %p114_p2 = pnand %p598_p0, %p113_p1 }
   0x5   : > { %v179_v0 = vld [vmem:[%s941_s1] sm:$0xff] (!%p114_p2)  ;;  %v180_v1 = vld [vmem:[%s941_s1 + $0x8] sm:$0xff] (!%p114_p2)  ;;  %v181_v2 = vld [vmem:[%s941_s1 + $0x10] sm:$0xff] (!%p114_p2)  ;;  %s599_s17 = sshll.u32 (!%p114_p2), %s594_s10, 5  ;;  %vm183_vm0 = vcmask (!%p114_p2), 261120   ;;  %vm505_vm1 = vcmask (!%p114_p2), 523264  }
   0x6   : > { %117 = sbr.rel (%p114_p2) target bundleno = 261 (0x105), region = 28  ;;  %v729_v3 = vpack.c.bf16 (!%p114_p2), %v180_v1, %v179_v0  ;;  %v182_v4 = vld [vmem:[%s941_s1 + $0x18] sm:$0xff] (!%p114_p2)  ;;  %p136_p3 = scmp.lt.s32.totalorder (!%p114_p2), %s599_s17, 63 }
   0x7   : > { %v733_v5 = vpack.c.bf16 (!%p114_p2), %v182_v4, %v181_v2 }
   0x8   : > { %730 = vmatprep.subr.bf16.mxu0 (!%p114_p2), %v729_v3  ;;  %737 = vmatprep.subr.bf16.mxu1 (!%p114_p2), %v729_v3 }
   0x9   : > { %732 = vmatpush3.bf16.msra.mxu0 (!%p114_p2), %v729_v3  ;;  %739 = vmatpush3.bf16.msra.mxu1 (!%p114_p2), %v729_v3 }
   0xa   : > { %734 = vmatprep.subr.bf16.mxu0 (!%p114_p2), %v733_v5  ;;  %738 = vmatprep.subr.bf16.mxu1 (!%p114_p2), %v733_v5 }
   0xd   : > { %s944_s17 = smov (!%p136_p3, %s599_s17), 63  ;;  %736 = vmatpush3.bf16.msra.mxu0 %v733_v5  ;;  %740 = vmatpush3.bf16.msra.mxu1 %v733_v5 }
   0xe   : > { %s600_s20 = sshll.u32 %s944_s17, 3 }
   0xf   : > { %s800_s23 = scalar_lea.vmem %s940_s0, %s600_s20  ;;  %s871_s26 = scalar_lea.vmem %s942_s2, %s600_s20 }
  0x10   : > { %v147_v6 = vld [vmem:[%s800_s23] sm:$0xff]  ;;  %v148_v8 = vld [vmem:[%s800_s23 + $0x8] sm:$0xff]  ;;  %v149_v10 = vld [vmem:[%s800_s23 + $0x10] sm:$0xff] }
  0x11   : > { %v163_v7 = vld [vmem:[%s800_s23 + $0x80] sm:$0xff]  ;;  %v164_v9 = vld [vmem:[%s800_s23 + $0x88] sm:$0xff]  ;;  %681 = vmatprep.mubr.msk.f32.mxu0 %vm183_vm0, %v147_v6  ;;  %v165_v11 = vld [vmem:[%s800_s23 + $0x90] sm:$0xff] }
  0x12   : > { %705 = vmatprep.mubr.msk.f32.mxu1 %vm183_vm0, %v163_v7  ;;  %682 = vmatmul.mubr.msk.f32.vlgmr.msra.gmra.mrb[0].mxu0 %vm183_vm0, %v148_v8  ;;  %v150_v12 = vld [vmem:[%s800_s23 + $0x18] sm:$0xff]  ;;  %v151_v14 = vld [vmem:[%s800_s23 + $0x20] sm:$0xff]  ;;  %v152_v16 = vld [vmem:[%s800_s23 + $0x28] sm:$0xff] }
  0x13   : > { %706 = vmatmul.mubr.msk.f32.vlgmr.msra.gmra.mrb[0].mxu1 %vm183_vm0, %v164_v9  ;;  %684 = vmatprep.mubr.msk.f32.mxu0 %vm183_vm0, %v149_v10  ;;  %v166_v13 = vld [vmem:[%s800_s23 + $0x98] sm:$0xff]  ;;  %v167_v15 = vld [vmem:[%s800_s23 + $0xa0] sm:$0xff]  ;;  %v168_v17 = vld [vmem:[%s800_s23 + $0xa8] sm:$0xff] }
  0x14   : > { %708 = vmatprep.mubr.msk.f32.mxu1 %vm183_vm0, %v165_v11  ;;  %v153_v18 = vld [vmem:[%s800_s23 + $0x30] sm:$0xff]  ;;  %v154_v20 = vld [vmem:[%s800_s23 + $0x38] sm:$0xff]  ;;  %v155_v22 = vld [vmem:[%s800_s23 + $0x40] sm:$0xff] }
  0x15   : > { %v169_v19 = vld [vmem:[%s800_s23 + $0xb0] sm:$0xff]  ;;  %v170_v21 = vld [vmem:[%s800_s23 + $0xb8] sm:$0xff]  ;;  %v171_v23 = vld [vmem:[%s800_s23 + $0xc0] sm:$0xff] }
  0x16   : > { %685 = vmatmul.mubr.msk.f32.gmra.mrb[2].mxu0 %vm183_vm0, %v150_v12  ;;  %v156_v24 = vld [vmem:[%s800_s23 + $0x48] sm:$0xff]  ;;  %v157_v26 = vld [vmem:[%s800_s23 + $0x50] sm:$0xff]  ;;  %v158_v28 = vld [vmem:[%s800_s23 + $0x58] sm:$0xff] }
  0x17   : > { %709 = vmatmul.mubr.msk.f32.gmra.mrb[2].mxu1 %vm183_vm0, %v166_v13  ;;  %687 = vmatprep.mubr.msk.f32.mxu0 %vm183_vm0, %v151_v14  ;;  %v172_v25 = vld [vmem:[%s800_s23 + $0xc8] sm:$0xff]  ;;  %v173_v27 = vld [vmem:[%s800_s23 + $0xd0] sm:$0xff]  ;;  %v174_v29 = vld [vmem:[%s800_s23 + $0xd8] sm:$0xff] }
  0x18   : > { %711 = vmatprep.mubr.msk.f32.mxu1 %vm183_vm0, %v167_v15  ;;  %v159_v30 = vld [vmem:[%s800_s23 + $0x60] sm:$0xff]  ;;  %v160_v32 = vld [vmem:[%s800_s23 + $0x68] sm:$0xff]  ;;  %v161_v34 = vld [vmem:[%s800_s23 + $0x70] sm:$0xff] }
  0x19   : > { %v175_v31 = vld [vmem:[%s800_s23 + $0xe0] sm:$0xff]  ;;  %v176_v33 = vld [vmem:[%s800_s23 + $0xe8] sm:$0xff]  ;;  %v177_v35 = vld [vmem:[%s800_s23 + $0xf0] sm:$0xff] }
  0x1a   : > { %688 = vmatmul.mubr.msk.f32.gmra.mrb[4].mxu0 %vm183_vm0, %v152_v16  ;;  %v162_v36 = vld [vmem:[%s800_s23 + $0x78] sm:$0xff] }
  0x1b   : > { %712 = vmatmul.mubr.msk.f32.gmra.mrb[4].mxu1 %vm183_vm0, %v168_v17  ;;  %690 = vmatprep.mubr.msk.f32.mxu0 %vm183_vm0, %v153_v18  ;;  %v178_v37 = vld [vmem:[%s800_s23 + $0xf8] sm:$0xff] }
  0x1c   : > { %714 = vmatprep.mubr.msk.f32.mxu1 %vm183_vm0, %v169_v19 }
  0x1e   : > { %691 = vmatmul.mubr.msk.f32.gmra.mrb[6].mxu0 %vm183_vm0, %v154_v20 }
  0x1f   : > { %715 = vmatmul.mubr.msk.f32.gmra.mrb[6].mxu1 %vm183_vm0, %v170_v21  ;;  %693 = vmatprep.mubr.msk.f32.mxu0 %vm183_vm0, %v155_v22 }
  0x20   : > { %717 = vmatprep.mubr.msk.f32.mxu1 %vm183_vm0, %v171_v23 }
  0x22   : > { %694 = vmatmul.mubr.msk.f32.gmra.mrb[8].mxu0 %vm183_vm0, %v156_v24 }
  0x23   : > { %718 = vmatmul.mubr.msk.f32.gmra.mrb[8].mxu1 %vm183_vm0, %v172_v25  ;;  %696 = vmatprep.mubr.msk.f32.mxu0 %vm183_vm0, %v157_v26 }
  0x24   : > { %720 = vmatprep.mubr.msk.f32.mxu1 %vm183_vm0, %v173_v27 }
  0x26   : > { %697 = vmatmul.mubr.msk.f32.gmra.mrb[10].mxu0 %vm183_vm0, %v158_v28 }
  0x27   : > { %721 = vmatmul.mubr.msk.f32.gmra.mrb[10].mxu1 %vm183_vm0, %v174_v29  ;;  %699 = vmatprep.mubr.msk.f32.mxu0 %vm183_vm0, %v159_v30 }
  0x28   : > { %723 = vmatprep.mubr.msk.f32.mxu1 %vm183_vm0, %v175_v31 }
  0x2a   : > { %700 = vmatmul.mubr.msk.f32.gmra.mrb[12].mxu0 %vm183_vm0, %v160_v32 }
  0x2b   : > { %724 = vmatmul.mubr.msk.f32.gmra.mrb[12].mxu1 %vm183_vm0, %v176_v33  ;;  %702 = vmatprep.mubr.msk.f32.mxu0 %vm183_vm0, %v161_v34 }
  0x2c   : > { %726 = vmatprep.mubr.msk.f32.mxu1 %vm183_vm0, %v177_v35 }
  0x2e   : > { %703 = vmatmul.mubr.msk.f32.gmra.mrb[14].mxu0 %vm183_vm0, %v162_v36 }
  0x2f   : > { %727 = vmatmul.mubr.msk.f32.gmra.mrb[14].mxu1 %vm183_vm0, %v178_v37 }
  0xe5   : > { %v683_v38 = vpop.f32.mrb[0].mxu0 }
  0xe6   : > { %v707_v39 = vpop.f32.mrb[0].mxu1  ;;  %507 = vst.msk [vmem:[%s871_s26 + $0x8] sm:$0xff] %vm505_vm1, %v683_v38  ;;  %v346_v40 = vpop.f32.mrb[1].mxu0 }
  0xe7   : > { %523 = vst.msk [vmem:[%s871_s26 + $0x88] sm:$0xff] %vm505_vm1, %v707_v39  ;;  %v426_v41 = vpop.f32.mrb[1].mxu1  ;;  %506 = vst.msk [vmem:[%s871_s26] sm:$0xff] %vm505_vm1, %v346_v40 }
  0xe8   : > { %522 = vst.msk [vmem:[%s871_s26 + $0x80] sm:$0xff] %vm505_vm1, %v426_v41 }
  0xe9   : > { %v686_v42 = vpop.f32.mrb[2].mxu0 }
  0xea   : > { %v710_v43 = vpop.f32.mrb[2].mxu1  ;;  %509 = vst.msk [vmem:[%s871_s26 + $0x18] sm:$0xff] %vm505_vm1, %v686_v42  ;;  %v356_v44 = vpop.f32.mrb[3].mxu0 }
  0xeb   : > { %525 = vst.msk [vmem:[%s871_s26 + $0x98] sm:$0xff] %vm505_vm1, %v710_v43  ;;  %v436_v45 = vpop.f32.mrb[3].mxu1  ;;  %508 = vst.msk [vmem:[%s871_s26 + $0x10] sm:$0xff] %vm505_vm1, %v356_v44 }
  0xec   : > { %524 = vst.msk [vmem:[%s871_s26 + $0x90] sm:$0xff] %vm505_vm1, %v436_v45 }
  0xed   : > { %v689_v46 = vpop.f32.mrb[4].mxu0 }
  0xee   : > { %v713_v47 = vpop.f32.mrb[4].mxu1  ;;  %511 = vst.msk [vmem:[%s871_s26 + $0x28] sm:$0xff] %vm505_vm1, %v689_v46  ;;  %v366_v48 = vpop.f32.mrb[5].mxu0 }
  0xef   : > { %527 = vst.msk [vmem:[%s871_s26 + $0xa8] sm:$0xff] %vm505_vm1, %v713_v47  ;;  %v446_v49 = vpop.f32.mrb[5].mxu1  ;;  %510 = vst.msk [vmem:[%s871_s26 + $0x20] sm:$0xff] %vm505_vm1, %v366_v48 }
  0xf0   : > { %526 = vst.msk [vmem:[%s871_s26 + $0xa0] sm:$0xff] %vm505_vm1, %v446_v49 }
  0xf1   : > { %v692_v50 = vpop.f32.mrb[6].mxu0 }
  0xf2   : > { %v716_v51 = vpop.f32.mrb[6].mxu1  ;;  %513 = vst.msk [vmem:[%s871_s26 + $0x38] sm:$0xff] %vm505_vm1, %v692_v50  ;;  %v376_v52 = vpop.f32.mrb[7].mxu0 }
  0xf3   : > { %529 = vst.msk [vmem:[%s871_s26 + $0xb8] sm:$0xff] %vm505_vm1, %v716_v51  ;;  %v456_v53 = vpop.f32.mrb[7].mxu1  ;;  %512 = vst.msk [vmem:[%s871_s26 + $0x30] sm:$0xff] %vm505_vm1, %v376_v52 }
  0xf4   : > { %528 = vst.msk [vmem:[%s871_s26 + $0xb0] sm:$0xff] %vm505_vm1, %v456_v53 }
  0xf5   : > { %v695_v54 = vpop.f32.mrb[8].mxu0 }
  0xf6   : > { %v719_v55 = vpop.f32.mrb[8].mxu1  ;;  %515 = vst.msk [vmem:[%s871_s26 + $0x48] sm:$0xff] %vm505_vm1, %v695_v54  ;;  %v386_v56 = vpop.f32.mrb[9].mxu0 }
  0xf7   : > { %531 = vst.msk [vmem:[%s871_s26 + $0xc8] sm:$0xff] %vm505_vm1, %v719_v55  ;;  %v466_v57 = vpop.f32.mrb[9].mxu1  ;;  %514 = vst.msk [vmem:[%s871_s26 + $0x40] sm:$0xff] %vm505_vm1, %v386_v56 }
  0xf8   : > { %530 = vst.msk [vmem:[%s871_s26 + $0xc0] sm:$0xff] %vm505_vm1, %v466_v57 }
  0xf9   : > { %v698_v58 = vpop.f32.mrb[10].mxu0 }
  0xfa   : > { %v722_v59 = vpop.f32.mrb[10].mxu1  ;;  %517 = vst.msk [vmem:[%s871_s26 + $0x58] sm:$0xff] %vm505_vm1, %v698_v58  ;;  %v396_v60 = vpop.f32.mrb[11].mxu0 }
  0xfb   : > { %533 = vst.msk [vmem:[%s871_s26 + $0xd8] sm:$0xff] %vm505_vm1, %v722_v59  ;;  %v476_v61 = vpop.f32.mrb[11].mxu1  ;;  %516 = vst.msk [vmem:[%s871_s26 + $0x50] sm:$0xff] %vm505_vm1, %v396_v60 }
  0xfc   : > { %532 = vst.msk [vmem:[%s871_s26 + $0xd0] sm:$0xff] %vm505_vm1, %v476_v61 }
  0xfd   : > { %v701_v62 = vpop.f32.mrb[12].mxu0 }
  0xfe   : > { %v725_v63 = vpop.f32.mrb[12].mxu1  ;;  %519 = vst.msk [vmem:[%s871_s26 + $0x68] sm:$0xff] %vm505_vm1, %v701_v62  ;;  %v406_v0 = vpop.f32.mrb[13].mxu0 }
  0xff   : > { %535 = vst.msk [vmem:[%s871_s26 + $0xe8] sm:$0xff] %vm505_vm1, %v725_v63  ;;  %v486_v1 = vpop.f32.mrb[13].mxu1  ;;  %518 = vst.msk [vmem:[%s871_s26 + $0x60] sm:$0xff] %vm505_vm1, %v406_v0 }
 0x100   : > { %534 = vst.msk [vmem:[%s871_s26 + $0xe0] sm:$0xff] %vm505_vm1, %v486_v1 }
 0x101   : > { %v704_v2 = vpop.f32.mrb[14].mxu0 }
 0x102   : > { %v728_v3 = vpop.f32.mrb[14].mxu1  ;;  %521 = vst.msk [vmem:[%s871_s26 + $0x78] sm:$0xff] %vm505_vm1, %v704_v2  ;;  %v416_v4 = vpop.f32.mrb[15].mxu0 }
 0x103   : > { %537 = vst.msk [vmem:[%s871_s26 + $0xf8] sm:$0xff] %vm505_vm1, %v728_v3  ;;  %v496_v5 = vpop.f32.mrb[15].mxu1  ;;  %520 = vst.msk [vmem:[%s871_s26 + $0x70] sm:$0xff] %vm505_vm1, %v416_v4 }
 0x104   : > { %536 = vst.msk [vmem:[%s871_s26 + $0xf0] sm:$0xff] %vm505_vm1, %v496_v5 }
 0x105 PF: > { %s12_s9 = sadd.s32 1, %s755_s9  }
 0x106   : > { %p9_p4 = scmp.ge.s32.totalorder %s12_s9, 4  }
 0x108   :  { %11 = sbr.rel (!%p9_p4) target bundleno = 1 (0x1), region = 58 }

</bundles_post_ra>
